<compile_context>
chip_gen: v5e
topology: v5e:2x2
jax: 0.10.0
libtpu: 0.0.40
codegen_flags: <defaults>
</compile_context>

<pallas_src>
import functools

import jax
import jax.numpy as jnp
import numpy as np
from jax.experimental import pallas as pl
from jax.experimental.pallas import tpu as pltpu

SMOOTH = 1e-4  # matches self.smooth in the PyTorch module


def _round_up(x, m):
    return ((x + m - 1) // m) * m


def _focal_loss_kernel(alpha_ref, logit_ref, target_ref, out_ref, *,
                       gamma, spatial, tile_m):
    i = pl.program_id(1)  # spatial-tile index (reduction axis)

    # Zero the per-batch-element lane-wide accumulator on its first tile.
    @pl.when(i == 0)
    def _():
        out_ref[...] = jnp.zeros_like(out_ref)

    x = logit_ref[...].astype(jnp.float32)               # (C, tile_m)

    # Numerically-stable softmax pieces over the class (sublane) axis.
    m = jnp.max(x, axis=0, keepdims=True)                # (1, tile_m)
    e = jnp.exp(x - m)                                   # (C, tile_m)
    denom = jnp.sum(e, axis=0, keepdims=True)            # (1, tile_m)

    tgt = target_ref[...]                                # (1, tile_m) int32
    cls = jax.lax.broadcasted_iota(jnp.int32, x.shape, 0)
    onehot = (cls == tgt).astype(jnp.float32)            # (C, tile_m)

    # Gather first, normalize only the gathered row (single divide per lane).
    e_t = jnp.sum(e * onehot, axis=0, keepdims=True)          # (1, tile_m)
    alpha_t = jnp.sum(alpha_ref[...] * onehot, axis=0, keepdims=True)

    pt = e_t / denom + SMOOTH                                  # exact divide
    logpt = jnp.log(pt)
    loss = -alpha_t * ((1.0 - pt) ** gamma) * logpt            # (1, tile_m)

    # Mask lanes past the true spatial extent (cdiv-padded tiles).
    lane = jax.lax.broadcasted_iota(jnp.int32, (1, tile_m), 1)
    valid = (i * tile_m + lane) < spatial
    out_ref[...] += jnp.where(valid, loss, 0.0)


def focal_loss(logit, target, alpha=None, gamma=2, tile_m=2048):
    """Focal loss with 'mean' reduction (ignore_index=None)."""
    # TODO(synk): ignore_index masking and reduction='none' not implemented
    # (module defaults are ignore_index=None, reduction='mean').
    N, C = logit.shape[:2]
    spatial = 1
    for d in logit.shape[2:]:
        spatial *= d
    total = N * spatial

    # Keep gamma an integer power when possible (VPU integer_pow, not EUP).
    if isinstance(gamma, float) and float(gamma).is_integer():
        gamma = int(gamma)

    if alpha is None:
        alpha = jnp.ones((C,), jnp.float32)
    elif isinstance(alpha, (int, float)):
        alpha = jnp.full((C,), float(alpha), jnp.float32)
    alpha_col = jnp.asarray(alpha, jnp.float32).reshape(C, 1)

    # Tile-size selection: lane-aligned (multiple of 128) unless the block
    # spans the full spatial dim, never larger than the array dim.
    tile_m = _round_up(max(int(tile_m), 128), 128)
    if spatial % 128 == 0:
        tile_m = min(tile_m, spatial)
    elif spatial < tile_m:
        tile_m = spatial  # full-dim block, alignment constraint satisfied
    num_tiles = pl.cdiv(spatial, tile_m)

    # Contiguous reshapes only — no host-side transpose / extra HBM pass.
    x = logit.reshape(N, C, spatial)
    t = target.reshape(N, 1, spatial).astype(jnp.int32)

    kernel = functools.partial(
        _focal_loss_kernel, gamma=gamma, spatial=spatial, tile_m=tile_m)

    partials = pl.pallas_call(
        kernel,
        out_shape=jax.ShapeDtypeStruct((N, 1, tile_m), jnp.float32),
        grid_spec=pltpu.PrefetchScalarGridSpec(
            num_scalar_prefetch=0,
            grid=(N, num_tiles),
            in_specs=[
                pl.BlockSpec((C, 1), lambda n, i: (0, 0)),            # alpha
                pl.BlockSpec((pl.Squeezed(), C, tile_m),
                             lambda n, i: (n, 0, i)),                 # logits
                pl.BlockSpec((pl.Squeezed(), 1, tile_m),
                             lambda n, i: (n, 0, i)),                 # targets
            ],
            out_specs=pl.BlockSpec((pl.Squeezed(), 1, tile_m),
                                   lambda n, i: (n, 0, 0)),           # partial sums
        ),
        compiler_params=pltpu.CompilerParams(
            dimension_semantics=("parallel", "arbitrary"),
        ),
    )(alpha_col, x, t)

    # 'mean' reduction: tiny final reduction over (N, 1, tile_m) on the host.
    return jnp.sum(partials) / float(total)


def _reference_focal_loss(logit, target, alpha, gamma=2):
    """Pure-JAX re-statement of the PyTorch forward (mean reduction)."""
    N, C = logit.shape[:2]
    prob = jax.nn.softmax(logit, axis=1)
    prob = prob.reshape(N, C, -1).transpose(0, 2, 1).reshape(-1, C)
    t = target.reshape(-1)
    pt = prob[jnp.arange(t.shape[0]), t] + SMOOTH
    logpt = jnp.log(pt)
    a = alpha[t]
    loss = -a * (1.0 - pt) ** gamma * logpt
    return loss.mean()


if __name__ == "__main__":
    num_class = 4
    N, H, W = 2, 16, 16

    key = jax.random.PRNGKey(0)
    k_logit, k_target = jax.random.split(key)
    logits = jax.random.normal(k_logit, (N, num_class, H, W), jnp.float32)
    targets = jax.random.randint(k_target, (N, H, W), 0, num_class, jnp.int32)

    # Deterministic "parameters": alpha defaults to ones(num_class) as in __init__.
    alpha = jnp.ones((num_class,), jnp.float32)
    gamma = 2

    loss = focal_loss(logits, targets, alpha=alpha, gamma=gamma)
    loss = jax.block_until_ready(loss)

    ref = _reference_focal_loss(logits, targets, alpha, gamma=gamma)
    np.testing.assert_allclose(np.asarray(loss), np.asarray(ref), rtol=1e-5, atol=1e-6)

    print("KERNEL_OK")
</pallas_src>

<mosaic_0001>
module attributes {stable_mosaic.version = 11 : i64} {
  func.func @_focal_loss_kernel(%arg0: i32, %arg1: i32, %arg2: memref<4x1xf32, #tpu.memory_space<vmem>>, %arg3: memref<1x4x256xf32, #tpu.memory_space<vmem>>, %arg4: memref<1x1x256xi32, #tpu.memory_space<vmem>>, %arg5: memref<1x1x256xf32, #tpu.memory_space<vmem>>) attributes {dimension_semantics = [#tpu.dimension_semantics<parallel>, #tpu.dimension_semantics<arbitrary>], iteration_bounds = array<i64: 2, 1>, scalar_prefetch = 0 : i64, scratch_operands = 0 : i64, tpu.core_type = #tpu.core_type<tc>, window_params = [{pipeline_mode = #tpu.pipeline_mode<synchronous>, transform_indices = @transform_0, window_bounds = array<i64: 4, 1>}, {transform_indices = @transform_1, window_bounds = array<i64: 1, 4, 256>}, {transform_indices = @transform_2, window_bounds = array<i64: 1, 1, 256>}, {transform_indices = @transform_3, window_bounds = array<i64: 1, 1, 256>}]} {
    %c0_i32 = arith.constant 0 : i32
    %0 = arith.cmpi eq, %arg1, %c0_i32 : i32
    %1 = arith.extui %0 : i1 to i32
    %c0_i32_0 = arith.constant 0 : i32
    %2 = arith.cmpi ne, %1, %c0_i32_0 : i32
    scf.if %2 {
      %cst_22 = arith.constant 0.000000e+00 : f32
      %52 = vector.broadcast %cst_22 : f32 to vector<1x256xf32>
      %c0_23 = arith.constant 0 : index
      %c0_24 = arith.constant 0 : index
      %c0_25 = arith.constant 0 : index
      %53 = vector.load %arg5[%c0_23, %c0_24, %c0_25] : memref<1x1x256xf32, #tpu.memory_space<vmem>>, vector<1x1x256xf32>
      %54 = vector.shape_cast %53 : vector<1x1x256xf32> to vector<1x256xf32>
      %55 = vector.shape_cast %52 : vector<1x256xf32> to vector<1x1x256xf32>
      tpu.vector_store %arg5[%c0_23, %c0_24, %c0_25], %55 {strides = array<i32>} : memref<1x1x256xf32, #tpu.memory_space<vmem>>, vector<1x1x256xf32>,
    } else {
    }
    %c0 = arith.constant 0 : index
    %c0_1 = arith.constant 0 : index
    %c0_2 = arith.constant 0 : index
    %3 = vector.load %arg3[%c0, %c0_1, %c0_2] : memref<1x4x256xf32, #tpu.memory_space<vmem>>, vector<1x4x256xf32>
    %4 = vector.shape_cast %3 : vector<1x4x256xf32> to vector<4x256xf32>
    %cst = arith.constant dense<0xFF800000> : vector<256xf32>
    %5 = vector.multi_reduction <maximumf>, %4, %cst [0] : vector<4x256xf32> to vector<256xf32>
    %6 = vector.shape_cast %5 : vector<256xf32> to vector<1x256xf32>
    %7 = vector.broadcast %6 : vector<1x256xf32> to vector<4x256xf32>
    %8 = arith.subf %4, %7 : vector<4x256xf32>
    %9 = math.exp %8 : vector<4x256xf32>
    %cst_3 = arith.constant dense<0.000000e+00> : vector<256xf32>
    %10 = vector.multi_reduction <add>, %9, %cst_3 [0] : vector<4x256xf32> to vector<256xf32>
    %11 = vector.shape_cast %10 : vector<256xf32> to vector<1x256xf32>
    %c0_4 = arith.constant 0 : index
    %c0_5 = arith.constant 0 : index
    %c0_6 = arith.constant 0 : index
    %12 = vector.load %arg4[%c0_4, %c0_5, %c0_6] : memref<1x1x256xi32, #tpu.memory_space<vmem>>, vector<1x1x256xi32>
    %13 = vector.shape_cast %12 : vector<1x1x256xi32> to vector<1x256xi32>
    %14 = tpu.iota {dimensions = array<i32: 0>} : vector<4x256xi32>
    %15 = vector.broadcast %13 : vector<1x256xi32> to vector<4x256xi32>
    %16 = arith.cmpi eq, %14, %15 : vector<4x256xi32>
    %17 = arith.extui %16 : vector<4x256xi1> to vector<4x256xi32>
    %18 = arith.sitofp %17 : vector<4x256xi32> to vector<4x256xf32>
    %19 = arith.mulf %9, %18 : vector<4x256xf32>
    %cst_7 = arith.constant dense<0.000000e+00> : vector<256xf32>
    %20 = vector.multi_reduction <add>, %19, %cst_7 [0] : vector<4x256xf32> to vector<256xf32>
    %21 = vector.shape_cast %20 : vector<256xf32> to vector<1x256xf32>
    %c0_8 = arith.constant 0 : index
    %c0_9 = arith.constant 0 : index
    %22 = vector.load %arg2[%c0_8, %c0_9] : memref<4x1xf32, #tpu.memory_space<vmem>>, vector<4x1xf32>
    %23 = vector.broadcast %22 : vector<4x1xf32> to vector<4x256xf32>
    %24 = arith.mulf %23, %18 : vector<4x256xf32>
    %cst_10 = arith.constant dense<0.000000e+00> : vector<256xf32>
    %25 = vector.multi_reduction <add>, %24, %cst_10 [0] : vector<4x256xf32> to vector<256xf32>
    %26 = vector.shape_cast %25 : vector<256xf32> to vector<1x256xf32>
    %27 = arith.divf %21, %11 : vector<1x256xf32>
    %cst_11 = arith.constant 9.99999974E-5 : f32
    %28 = vector.broadcast %cst_11 : f32 to vector<1x256xf32>
    %29 = arith.addf %27, %28 : vector<1x256xf32>
    %30 = math.log %29 : vector<1x256xf32>
    %cst_12 = arith.constant 0.000000e+00 : f32
    %31 = vector.broadcast %cst_12 : f32 to vector<1x256xf32>
    %32 = arith.subf %31, %26 : vector<1x256xf32>
    %cst_13 = arith.constant 1.000000e+00 : f32
    %33 = vector.broadcast %cst_13 : f32 to vector<1x256xf32>
    %34 = arith.subf %33, %29 : vector<1x256xf32>
    %35 = arith.mulf %34, %34 : vector<1x256xf32>
    %36 = arith.mulf %32, %35 : vector<1x256xf32>
    %37 = arith.mulf %36, %30 : vector<1x256xf32>
    %38 = tpu.iota {dimensions = array<i32: 1>} : vector<1x256xi32>
    %c256_i32 = arith.constant 256 : i32
    %39 = arith.muli %arg1, %c256_i32 : i32
    %40 = vector.broadcast %39 : i32 to vector<1x256xi32>
    %41 = arith.addi %40, %38 : vector<1x256xi32>
    %c256_i32_14 = arith.constant 256 : i32
    %42 = vector.broadcast %c256_i32_14 : i32 to vector<1x256xi32>
    %43 = arith.cmpi slt, %41, %42 : vector<1x256xi32>
    %c0_15 = arith.constant 0 : index
    %c0_16 = arith.constant 0 : index
    %c0_17 = arith.constant 0 : index
    %44 = vector.load %arg5[%c0_15, %c0_16, %c0_17] : memref<1x1x256xf32, #tpu.memory_space<vmem>>, vector<1x1x256xf32>
    %45 = vector.shape_cast %44 : vector<1x1x256xf32> to vector<1x256xf32>
    %cst_18 = arith.constant 0.000000e+00 : f32
    %46 = vector.broadcast %cst_18 : f32 to vector<1x256xf32>
    %47 = arith.select %43, %37, %46 : vector<1x256xi1>, vector<1x256xf32>
    %48 = arith.addf %45, %47 : vector<1x256xf32>
    %c0_19 = arith.constant 0 : index
    %c0_20 = arith.constant 0 : index
    %c0_21 = arith.constant 0 : index
    %49 = vector.load %arg5[%c0_19, %c0_20, %c0_21] : memref<1x1x256xf32, #tpu.memory_space<vmem>>, vector<1x1x256xf32>
    %50 = vector.shape_cast %49 : vector<1x1x256xf32> to vector<1x256xf32>
    %51 = vector.shape_cast %48 : vector<1x256xf32> to vector<1x1x256xf32>
    tpu.vector_store %arg5[%c0_19, %c0_20, %c0_21], %51 {strides = array<i32>} : memref<1x1x256xf32, #tpu.memory_space<vmem>>, vector<1x1x256xf32>,
    return
  }
  func.func @transform_0(%arg0: i32, %arg1: i32) -> (i32, i32) {
    %c0_i32 = arith.constant 0 : i32
    %c0_i32_0 = arith.constant 0 : i32
    %c0_i32_1 = arith.constant 0 : i32
    return %c0_i32, %c0_i32_0 : i32, i32
  }
  func.func @transform_1(%arg0: i32, %arg1: i32) -> (i32, i32, i32) {
    %c0_i32 = arith.constant 0 : i32
    %c0_i32_0 = arith.constant 0 : i32
    return %arg0, %c0_i32, %arg1 : i32, i32, i32
  }
  func.func @transform_2(%arg0: i32, %arg1: i32) -> (i32, i32, i32) {
    %c0_i32 = arith.constant 0 : i32
    %c0_i32_0 = arith.constant 0 : i32
    return %arg0, %c0_i32, %arg1 : i32, i32, i32
  }
  func.func @transform_3(%arg0: i32, %arg1: i32) -> (i32, i32, i32) {
    %c0_i32 = arith.constant 0 : i32
    %c0_i32_0 = arith.constant 0 : i32
    %c0_i32_1 = arith.constant 0 : i32
    return %arg0, %c0_i32, %c0_i32_0 : i32, i32, i32
  }
}

</mosaic_0001>

<bundles_post_ra>
// kernel: tpu_custom_call.1
= control target key start
LH: loop header
LB: loop body
LE: loop exit
PB: predicated region body
PF: predicated region fallthrough
CT: control target
= control target key end

     0   :  { %8 = vsyncpa [#allocation3], 0  ;;  %s925_s0 = inlined_call_operand.vmem [shape: f32[4,1], index: 0, kind: input, shape index: {}]   ;;  %s926_s1 = inlined_call_operand.hbm [shape: f32[2,4,256], index: 1, kind: input, shape index: {}]   ;;  %s927_s2 = inlined_call_operand.vmem [shape: s32[2,1,256], index: 2, kind: input, shape index: {}]   ;;  %s928_s3 = inlined_call_operand.hbm [shape: f32[2,1,256], index: 3, kind: output, shape index: {}]  }
   0x1   :  { %10 = vsyncpa [#allocation3 + $0x1], 0 }
   0x2   :  { %11 = vsyncpa [#allocation4], 0 }
   0x3   :  { %13 = vsyncpa [#allocation4 + $0x1], 0  ;;  %s768_s12 = smov 0   ;;  %s770_s13 = smov 0  }
   0x4   :  { %s772_s14 = smov 0   ;;  %s774_s15 = smov 0  }
   0x5   :  { %s776_s16 = smov 0   ;;  %s778_s17 = smov 0  }
   0x6 LB: > { %s539_s18 = sadd.s32 4294967295, %s744_s17   ;;  %s540_s19 = sadd.s32 4294967294, %s744_s17   ;;  %s744_s17 = sphi %s778_s17, %s19_s17   ;;  %s740_s16 = sphi %s776_s16, %s939_s16   ;;  %s736_s15 = sphi %s774_s15, %s938_s15   ;;  %s732_s14 = sphi %s772_s14, %s937_s14   ;;  %s728_s13 = sphi %s770_s13, %s936_s13   ;;  %s724_s12 = sphi %s768_s12, %s935_s12  }
   0x7   : > { %s31_s20 = sadd.s32 1, %s740_s16  ;;  %s61_s21 = sadd.s32 1, %s732_s14 }
   0x8   : > { %p33_p0 = scmp.ge.s32.totalorder %s31_s20, 2  ;;  %p68_p1 = scmp.ne.s32.totalorder %s732_s14, %s728_s13 }
   0x9   : > { %p69_p2 = scmp.eq.s32.totalorder %s744_s17, 0  ;;  %p74_p3 = scmp.ne.s32.totalorder %s728_s13, %s724_s12 }
   0xa   : > { %s941_s20 = smov (%p33_p0, %s31_s20), 0  ;;  %p75_p5 = scmp.eq.s32.totalorder %s539_s18, 0 }
   0xb   : > { %p809_p4 = por %p69_p2, %p68_p1  ;;  %s56_s23 = ssub.s32 %s740_s16, %s941_s20 }
   0xc   : > { %p126_p6 = scmp.eq.s32.totalorder %s539_s18, 1  ;;  %p59_p7 = scmp.eq.s32.totalorder %s56_s23, 0 }
   0xd   : > { %p815_p8 = por %p75_p5, %p74_p3  ;;  %p132_p10 = scmp.eq.s32.totalorder %s540_s19, 1 }
   0xe   : > { %p819_p9 = por %p126_p6, %p68_p1  ;;  %p542_p12 = scmp.ge.s32.totalorder %s744_s17, 2 }
   0xf   : > { %s824_s26 = scalar_select %p59_p7, %s732_s14, %s61_s21  }
  0x10   : > { %p826_p11 = por %p132_p10, %p74_p3  ;;  %p569_p13 = scmp.lt.s32.totalorder %s744_s17, 2 }
  0x11   : > { %s155_s28 = sand.u32 1, %s732_s14   ;;  %s556_s30 = sshll.u32 %s740_s16, 3 }
  0x12   : > { %s543_s29 = sshll.u32 %s155_s28, 3  ;;  %s166_s6 = scalar_lea.hbm %s926_s1, %s556_s30 }
  0x13   : > { %s159_s7 = scalar_lea.vmem [#allocation2], %s543_s29  ;;  %s168_s9 = sshll.u32 %s166_s6, 4  ;;  %s169_s9 = int_to_ptr.hbm [resolvable:$true] %s168_s9 }
  0x14   : > { %s170_s8 = sshll.u32 %s159_s7, 4  ;;  %p562_p0 = pnand %p569_p13, %p809_p4  ;;  %s171_s8 = int_to_ptr.vmem [resolvable:$true] %s170_s8 }
  0x15   : > { %p546_p1 = scmp.ge.s32.totalorder %s744_s17, 1  ;;  %p187_p2 = scmp.lt.s32.totalorder %s744_s17, 3 }
  0x16   : > { %s156_s10 = scalar_lea.sflag [#allocation3], %s155_s28 }
  0x17   : > { %564 = dma.hbm_to_vmem [thread:$0]  (!%p562_p0), %s169_s9, 128, %s171_s8, %s156_s10  }
  0x18   : > { %p188_p3 = pnand %p546_p1, %p187_p2 }
  0x19   : > { %s842_s11 = sand.u32 (!%p188_p3), 1, %s728_s13  }
  0x1a   : > { %191 = sbr.rel (%p188_p3) target bundleno = 178 (0xb2), region = 32  ;;  %s547_s18 = sshll.u32 (!%p188_p3), %s842_s11, 3 }
  0x1b   : > { %s194_s19 = scalar_lea.sflag (!%p188_p3), [#allocation3], %s842_s11  ;;  %s197_s21 = scalar_lea.vmem (!%p188_p3), [#allocation2], %s547_s18 }
  0x1f   : > { %715 = dma.done.wait (%p815_p8), %s194_s19, 128  }
  0x20   : > { %717 = vsyncadd (%p815_p8), %s194_s19, 4294967168  ;;  %s548_s22 = sshll.u32 %s842_s11, 1  ;;  %v243_v0 = vlaneseq  ;;  %v746_v1 = vmov 0   ;;  %v747_v3 = vmov 0.0   ;;  %v335_v4 = vld [vmem:[%s925_s0] sm:$0xf] }
  0x21   : > { %621 = vset.pattern.permute.xlu0 %v746_v1  ;;  %s855_s23 = scalar_lea.vmem [#allocation5], %s548_s22  ;;  %v248_v5 = vld [vmem:[%s197_s21] sm:$0xff]  ;;  %vm255_vm1 = vcmask 1043456   ;;  %p231_p4 = scmp.lt.s32.totalorder %s736_s15, 1  ;;  %vm418_vm12 = vcmask 1040384  }
  0x22   : > { %vm851_vm0 = vcmp.lt.s32.totalorder %v243_v0, 256  ;;  %338 = vperm.xlu0 %621, %v335_v4   ;;  %250 = vst [vmem:[#allocation1] ss:$2 sm:$0xff] %v248_v5  ;;  %v300_v27 = vshrl.u32 %v243_v0, 7  ;;  %s553_s7 = sshll.u32 %s736_s15, 1  ;;  %s440_s18 = sshll.u32 %s855_s23, 4  ;;  %s441_s18 = int_to_ptr.vmem [resolvable:$true] %s440_s18 }
  0x23   : > { %247 = vst.msk [vmem:[%s855_s23] sm:$0x3] %vm851_vm0, %v747_v3  ;;  %s232_s24 = scalar_select %p231_p4, %s736_s15, 1 }
  0x24   : > { %s438_s10 = scalar_lea.hbm %s928_s3, %s553_s7  ;;  %s428_s15 = scalar_lea.sflag [#allocation4], %s842_s11 }
  0x25   : > { %s549_s30 = sshll.u32 %s232_s24, 1  ;;  %s442_s19 = sshll.u32 %s438_s10, 4  ;;  %s443_s19 = int_to_ptr.hbm [resolvable:$true] %s442_s19 }
  0x26   : > { %s237_s6 = scalar_lea.vmem %s927_s2, %s549_s30  ;;  %s676_s21 = sshra.s32 %s443_s19, 4  ;;  %s677_s21 = int_to_ptr.hbm [resolvable:$true] %s676_s21 }
  0x27   : > { %v298_v32 = vld [vmem:[%s237_s6] sm:$0x3]  ;;  %s678_s22 = scalar_lea.hbm %s677_s21, 2  ;;  %s682_s24 = scalar_lea.hbm %s928_s3, 4 }
  0x28   : > { %v302_v35 = vperm.slane %v298_v32, 1  ;;  %v301_v36 = vperm.slane %v298_v32, 0  ;;  %p679_p5 = scmp.ne.s32.totalorder %s677_s21, %s678_s22  ;;  %p683_p8 = scmp.lt.s32.totalorder %s677_s21, %s928_s3 }
  0x29   : > { %v252_v6 = vld.sshfl [vmem:[#allocation1 + $0x8] sm:$0xff pattern:$0x75316420]  ;;  %v251_v8 = vld.sshfl [vmem:[#allocation1] sm:$0xff pattern:$0x75316420]  ;;  %p684_p10 = scmp.lt.s32.totalorder %s682_s24, %s678_s22 }
  0x2a   : > { %v263_v7 = vsel %vm255_vm1, %v252_v6, -inf  ;;  %v256_v10 = vsel %vm255_vm1, %v251_v8, -inf  ;;  %vm304_vm2 = vcmp.eq.s32.totalorder %v300_v27, %v302_v35  ;;  %vm303_vm3 = vcmp.eq.s32.totalorder %v300_v27, %v301_v36  ;;  %p680_p6 = pnand %p679_p5, %p819_p9 }
  0x2b   : > { %v264_v9 = vrot.slane %v263_v7, 4  ;;  %v257_v11 = vrot.slane %v256_v10, 4  ;;  %v873_v38 = vsel %vm304_vm2, 1.0, %v747_v3  ;;  %v550_v40 = vsel %vm303_vm3, 1.0, %v747_v3  ;;  %p685_p13 = por %p684_p10, %p683_p8 }
  0x2c   : > { %v311_v41 = vrot.slane %v873_v38, 4  ;;  %p681_p7 = pneg %p680_p6 }
  0x2d   : > { %v265_v12 = vmax.f32 %v263_v7, %v264_v9  ;;  %v258_v13 = vmax.f32 %v256_v10, %v257_v11 }
  0x2e   : > { %v312_v43 = vsel %vm255_vm1, %v550_v40, %v311_v41  ;;  %p686_p0 = pnand %p685_p13, %p681_p7 }
  0x2f   : > { %v266_v14 = vrot.slane %v265_v12, 2  ;;  %v259_v15 = vrot.slane %v258_v13, 2 }
  0x31   : > { %v267_v16 = vmax.f32 %v265_v12, %v266_v14  ;;  %v260_v17 = vmax.f32 %v258_v13, %v259_v15 }
  0x33   : > { %v268_v18 = vrot.slane %v267_v16, 1  ;;  %v261_v19 = vrot.slane %v260_v17, 1 }
  0x35   : > { %v269_v20 = vmax.f32 %v267_v16, %v268_v18  ;;  %v262_v21 = vmax.f32 %v260_v17, %v261_v19 }
  0x37   : > { %v272_v22 = vrot.slane %v269_v20, 4 }
  0x39   : > { %v273_v23 = vsel %vm255_vm1, %v262_v21, %v272_v22 }
  0x3a   : > { %v275_v24 = vsub.f32 %v248_v5, %v273_v23 }
  0x3c   : > { %v276_v25 = vmul.f32 1.442695, %v275_v24 }
  0x3e   : > { %622 = vpow2.f32 %v276_v25 }
  0x44   : > { %v623_v26 = vpop.eup %622 }
  0x45   : > { %279 = vst [vmem:[#allocation1] ss:$2 sm:$0xff] %v623_v26  ;;  %v314_v44 = vmul.f32 %v623_v26, %v312_v43 }
  0x4c   : > { %v280_v28 = vld.sshfl [vmem:[#allocation1] sm:$0xff pattern:$0x75316420]  ;;  %v281_v29 = vld.sshfl [vmem:[#allocation1 + $0x8] sm:$0xff pattern:$0x75316420] }
  0x4d   : > { %v284_v30 = vsel %vm255_vm1, %v280_v28, 0.0  ;;  %v291_v31 = vsel %vm255_vm1, %v281_v29, 0.0  ;;  %316 = vst [vmem:[#allocation1] ss:$2 sm:$0xff] %v314_v44 }
  0x4e   : > { %v285_v33 = vrot.slane %v284_v30, 4  ;;  %v292_v34 = vrot.slane %v291_v31, 4 }
  0x50   : > { %v293_v37 = vadd.f32 %v292_v34, %v291_v31  ;;  %v286_v39 = vadd.f32 %v285_v33, %v284_v30 }
  0x52   : > { %v294_v42 = vrot.slane %v293_v37, 2  ;;  %v287_v45 = vrot.slane %v286_v39, 2 }
  0x54   : > { %v295_v46 = vadd.f32 %v294_v42, %v293_v37  ;;  %v288_v47 = vadd.f32 %v287_v45, %v286_v39  ;;  %v318_v52 = vld.sshfl [vmem:[#allocation1 + $0x8] sm:$0xff pattern:$0x75316420]  ;;  %v317_v53 = vld.sshfl [vmem:[#allocation1] sm:$0xff pattern:$0x75316420] }
  0x55   : > { %v328_v54 = vsel %vm255_vm1, %v318_v52, 0.0  ;;  %v321_v55 = vsel %vm255_vm1, %v317_v53, 0.0 }
  0x56   : > { %v296_v48 = vrot.slane %v295_v46, 1  ;;  %v289_v49 = vrot.slane %v288_v47, 1  ;;  %v329_v57 = vrot.slane %v328_v54, 4  ;;  %v322_v59 = vrot.slane %v321_v55, 4 }
  0x58   : > { %v297_v50 = vadd.f32 %v296_v48, %v295_v46  ;;  %v290_v51 = vadd.f32 %v289_v49, %v288_v47  ;;  %v330_v61 = vadd.f32 %v329_v57, %v328_v54  ;;  %v323_v63 = vadd.f32 %v322_v59, %v321_v55 }
  0x5a   : > { %624 = vrcp.f32 %v297_v50  ;;  %v331_v1 = vrot.slane %v330_v61, 2  ;;  %v324_v4 = vrot.slane %v323_v63, 2  ;;  %vm377_vm4 = vweird.f32 %v297_v50 }
  0x5b   : > { %626 = vrcp.f32 %v290_v51  ;;  %v383_v9 = vand.u32 2147483648, %v297_v50  ;;  %vm362_vm6 = vweird.f32 %v290_v51  ;;  %v381_v11 = vand.u32 2147483647, %v297_v50 }
  0x5c   : > { %v332_v6 = vadd.f32 %v331_v1, %v330_v61  ;;  %v325_v8 = vadd.f32 %v324_v4, %v323_v63  ;;  %v368_v12 = vand.u32 2147483648, %v290_v51  ;;  %v366_v15 = vand.u32 2147483647, %v290_v51  ;;  %v412_v61 = vld [vmem:[%s855_s23] sm:$0x3] }
  0x5d   : > { %v384_v16 = vor.u32 1.1754944e-38, %v383_v9  ;;  %vm382_vm10 = vcmp.eq.f32.partialorder %v381_v11, 8.507059e+37 }
  0x5e   : > { %v333_v13 = vrot.slane %v332_v6, 1  ;;  %v326_v17 = vrot.slane %v325_v8, 1  ;;  %v369_v19 = vor.u32 1.1754944e-38, %v368_v12  ;;  %vm367_vm11 = vcmp.eq.f32.partialorder %v366_v15, 8.507059e+37 }
  0x60   : > { %v625_v56 = vpop.eup %624  ;;  %v334_v20 = vadd.f32 %v333_v13, %v332_v6  ;;  %v327_v23 = vadd.f32 %v326_v17, %v325_v8 }
  0x61   : > { %v627_v58 = vpop.eup %626  ;;  %v373_v60 = vmul.f32 %v625_v56, %v297_v50  ;;  %vm378_vm5 = vweird.f32 %v625_v56 }
  0x62   : > { %v358_v62 = vmul.f32 %v627_v58, %v290_v51  ;;  %vm363_vm7 = vweird.f32 %v627_v58  ;;  %vm379_vm8 = vmor %vm377_vm4, %vm378_vm5 }
  0x63   : > { %v374_v0 = vsub.f32 1.0, %v373_v60  ;;  %vm364_vm9 = vmor %vm362_vm6, %vm363_vm7 }
  0x64   : > { %v359_v3 = vsub.f32 1.0, %v358_v62 }
  0x65   : > { %v375_v5 = vmul.f32 %v625_v56, %v374_v0 }
  0x66   : > { %v360_v7 = vmul.f32 %v627_v58, %v359_v3 }
  0x67   : > { %v376_v10 = vadd.f32 %v625_v56, %v375_v5 }
  0x68   : > { %v361_v14 = vadd.f32 %v627_v58, %v360_v7 }
  0x69   : > { %v380_v18 = vsel %vm379_vm8, %v625_v56, %v376_v10 }
  0x6a   : > { %v365_v21 = vsel %vm364_vm9, %v627_v58, %v361_v14  ;;  %v385_v22 = vsel %vm382_vm10, %v384_v16, %v380_v18 }
  0x6b   : > { %v370_v24 = vsel %vm367_vm11, %v369_v19, %v365_v21  ;;  %v386_v25 = vmul.f32 %v385_v22, %v334_v20 }
  0x6c   : > { %v371_v29 = vmul.f32 %v370_v24, %v327_v23 }
  0x6d   : > { %v388_v32 = vadd.f32 0.0001, %v386_v25 }
  0x6e   : > { %v387_v35 = vadd.f32 0.0001, %v371_v29 }
  0x6f   : > { %628 = vlog2.f32 %v388_v32 }
  0x70   : > { %630 = vlog2.f32 %v387_v35  ;;  %v395_v43 = vsub.f32 1.0, %v387_v35 }
  0x72   : > { %v397_v49 = vmul.f32 %v395_v43, %v395_v43 }
  0x75   : > { %v629_v46 = vpop.eup %628 }
  0x76   : > { %v631_v51 = vpop.eup %630  ;;  %v392_v52 = vmul.f32 0.6931472, %v629_v46 }
  0x77   : > { %v390_v55 = vmul.f32 0.6931472, %v631_v51 }
  0x94   : > { %v339_v26 = vpop.permute.xlu0 %338 }
  0x95   : > { %v341_v27 = vmul.f32 %v550_v40, %v339_v26  ;;  %v342_v28 = vmul.f32 %v873_v38, %v339_v26  ;;  %v396_v38 = vsub.f32 1.0, %v388_v32 }
  0x97   : > { %v343_v30 = vsel %vm255_vm1, %v341_v27, 0.0  ;;  %v350_v31 = vsel %vm255_vm1, %v342_v28, 0.0  ;;  %v398_v50 = vmul.f32 %v396_v38, %v396_v38 }
  0x98   : > { %v344_v33 = vrot.slane %v343_v30, 4  ;;  %v351_v34 = vrot.slane %v350_v31, 4 }
  0x9a   : > { %v345_v36 = vadd.f32 %v344_v33, %v343_v30  ;;  %v352_v37 = vadd.f32 %v351_v34, %v350_v31 }
  0x9c   : > { %v346_v39 = vrot.slane %v345_v36, 2  ;;  %v353_v41 = vrot.slane %v352_v37, 2 }
  0x9e   : > { %v347_v42 = vadd.f32 %v346_v39, %v345_v36  ;;  %v354_v40 = vadd.f32 %v353_v41, %v352_v37 }
  0xa0   : > { %v348_v44 = vrot.slane %v347_v42, 1  ;;  %v355_v45 = vrot.slane %v354_v40, 1 }
  0xa2   : > { %v349_v47 = vadd.f32 %v348_v44, %v347_v42  ;;  %v356_v48 = vadd.f32 %v355_v45, %v354_v40 }
  0xa4   : > { %v393_v53 = vsub.f32 0.0, %v349_v47  ;;  %v394_v54 = vsub.f32 0.0, %v356_v48 }
  0xa6   : > { %v399_v56 = vmul.f32 %v397_v49, %v393_v53  ;;  %v400_v57 = vmul.f32 %v398_v50, %v394_v54 }
  0xa8   : > { %v402_v58 = vmul.f32 %v400_v57, %v392_v52  ;;  %v401_v59 = vmul.f32 %v399_v56, %v390_v55 }
  0xaa   : > { %v417_v60 = vrot.slane %v402_v58, 7 }
  0xac   : > { %v419_v62 = vsel %vm418_vm12, %v401_v59, %v417_v60 }
  0xad   : > { %v421_v63 = vadd.f32 %v419_v62, %v412_v61 }
  0xaf   : > { %426 = vst.msk [vmem:[%s855_s23] sm:$0x3] %vm851_vm0, %v421_v63 }
  0xb0   : > { %689 = shalt.err (!%p686_p0)
}
  0xb1   : > { %559 = dma.vmem_to_hbm [thread:$0]  (%p819_p9), %s441_s18, 32, %s443_s19, %s428_s15  }
  0xb2 PF: > { %s454_s11 = sand.u32 1, %s724_s12   ;;  %p566_p1 = pnand %p542_p12, %p826_p11 }
  0xb3   : > { %s455_s23 = scalar_lea.sflag [#allocation4], %s454_s11 }
  0xb4   : > { %p567_p2 = pneg %p566_p1 }
  0xb6   : > { %719 = dma.done.wait (%p567_p2), %s455_s23, 32  }
  0xb7   : > { %721 = vsyncadd (%p567_p2), %s455_s23, 4294967264  ;;  %s19_s17 = sadd.s32 1, %s744_s17   ;;  %s935_s12 = smov %s728_s13 }
  0xb8   : > { %p16_p3 = scmp.ge.s32.totalorder %s19_s17, 4   ;;  %s936_s13 = smov %s732_s14 }
  0xb9   : > { %s937_s14 = smov %s824_s26  ;;  %s938_s15 = smov %s740_s16 }
  0xba   : > { %s939_s16 = smov %s941_s20  ;;  %18 = sbr.rel (!%p16_p3) target bundleno = 6 (0x6), region = 84 }
  0xbf   :  { %461 = vsyncpa [#allocation3], 1 }
  0xc0   :  { %463 = vsyncpa [#allocation3 + $0x1], 1 }
  0xc1   :  { %464 = vsyncpa [#allocation4], 1 }
  0xc2   :  { %466 = vsyncpa [#allocation4 + $0x1], 1 }

</bundles_post_ra>
